<compile_context>
chip_gen: v6e
topology: v6e:2x2x1
jax: 0.10.0
libtpu: 0.0.40
codegen_flags: <defaults>
</compile_context>

<pallas_src>
import functools

import jax
import jax.numpy as jnp
from jax.experimental import pallas as pl
from jax.experimental.pallas import tpu as pltpu

_SELU_ALPHA = 1.6732632423543772
_SELU_SCALE = 1.0507009873554805


# Elementwise activation definitions matching torch.nn defaults.
_ACT_FNS = {
    None: lambda x: x,
    "relu": lambda x: jnp.maximum(x, 0.0),
    "relu6": lambda x: jnp.clip(x, 0.0, 6.0),
    "leakyrelu": lambda x: jnp.where(x >= 0, x, 0.01 * x),          # negative_slope=0.01
    "sigmoid": jax.nn.sigmoid,
    "tanh": jnp.tanh,
    "gelu": lambda x: jax.nn.gelu(x, approximate=False),            # nn.GELU default 'none'
    "elu": lambda x: jnp.where(x > 0, x, jnp.expm1(x)),             # alpha=1.0
    "celu": lambda x: jnp.where(x > 0, x, jnp.expm1(x)),            # alpha=1.0
    "selu": lambda x: _SELU_SCALE * jnp.where(x > 0, x, _SELU_ALPHA * jnp.expm1(x)),
    "silu": lambda x: x * jax.nn.sigmoid(x),
    "softplus": jax.nn.softplus,                                    # beta=1, threshold=20
    "softsign": lambda x: x / (1.0 + jnp.abs(x)),
    "hardtanh": lambda x: jnp.clip(x, -1.0, 1.0),
    "hardsigmoid": lambda x: jnp.clip(x / 6.0 + 0.5, 0.0, 1.0),
    "hardswish": lambda x: x * jnp.clip(x / 6.0 + 0.5, 0.0, 1.0),
    "mish": lambda x: x * jnp.tanh(jax.nn.softplus(x)),
    "logsigmoid": lambda x: -jax.nn.softplus(-x),
    "tanhshrink": lambda x: x - jnp.tanh(x),
    "softshrink": lambda x: jnp.where(x > 0.5, x - 0.5, jnp.where(x < -0.5, x + 0.5, 0.0)),
    "hardshrink": lambda x: jnp.where(jnp.abs(x) > 0.5, x, 0.0),
}
# TODO(synk): nn.Softmax / nn.LogSoftmax / nn.GLU (dim-dependent, not purely
# elementwise) are not wired into this elementwise kernel.

# Exact piecewise-linear activations: safe to compute in native dtype (e.g.
# bf16 on v6e/v7x) without an f32 round-trip.
_NATIVE_DTYPE_ACTS = frozenset({
    "relu", "relu6", "leakyrelu", "hardtanh", "hardsigmoid", "hardswish",
    "hardshrink", "softshrink",
})

# Widest lane width first — prefer divisors of the flat size (no HBM pad copy).
_LANE_CANDIDATES = (4096, 2048, 1024, 512, 256, 128)

# ~2 MiB per tile buffer.  With input+output each double-buffered (4 live
# buffers) this stays under the 16 MiB scoped-VMEM default on v5e and well
# under the 32 MiB default on v6e/v7x, while being large enough to hide the
# ~0.35 us per-grid-step overhead (HBM-bandwidth bound regime).
_TARGET_TILE_BYTES = 2 * 1024 * 1024


def _act_kernel(x_ref, o_ref, *, act, upcast):
    x = x_ref[...]
    if upcast:
        x = x.astype(jnp.float32)
    o_ref[...] = _ACT_FNS[act](x).astype(o_ref.dtype)


def activation(x, act=None):
    """Apply the named activation elementwise via a Pallas kernel (identity if None)."""
    if act not in _ACT_FNS:
        raise KeyError(f"{act} is not supported by this Pallas Activation kernel")
    if act is None:
        # Identity: bit-exact and free — never touch HBM.
        return x

    orig_shape = x.shape
    orig_dtype = x.dtype
    total = x.size
    if total == 0:
        return x

    # Lane-dense 2-D view (rows, lanes).  Prefer a lane width that divides the
    # flat size exactly so no padded copy (and no trailing slice) is needed.
    lanes = None
    for cand in _LANE_CANDIDATES:
        if total % cand == 0:
            lanes = cand
            break

    x_flat = x.reshape(-1)
    if lanes is None:
        # Rare path: flat size not a multiple of 128 — pad minimally (to one
        # wide row multiple), still far cheaper than the old block-multiple pad.
        lanes = 1024
        pad = (-total) % lanes
        x_flat = jnp.pad(x_flat, (0, pad))
    padded_total = x_flat.size
    rows = padded_total // lanes
    x2d = x_flat.reshape(rows, lanes)

    # Pick block_rows so one tile is ~_TARGET_TILE_BYTES; keep it a multiple of
    # 8 (sublane constraint) unless the whole array fits in a single block.
    itemsize = jnp.dtype(orig_dtype).itemsize
    target_rows = max(1, _TARGET_TILE_BYTES // (lanes * itemsize))
    if rows <= target_rows:
        block_rows = rows                       # single block == full array dim
    else:
        block_rows = max(8, (target_rows // 8) * 8)
    grid = (pl.cdiv(rows, block_rows),)         # ragged final block is clamped by Pallas

    # Only upcast when it matters (transcendental path on sub-f32 inputs).
    upcast = (act not in _NATIVE_DTYPE_ACTS) and (orig_dtype != jnp.float32)

    out = pl.pallas_call(
        functools.partial(_act_kernel, act=act, upcast=upcast),
        out_shape=jax.ShapeDtypeStruct((rows, lanes), orig_dtype),
        grid_spec=pltpu.PrefetchScalarGridSpec(
            num_scalar_prefetch=0,
            grid=grid,
            in_specs=[pl.BlockSpec((block_rows, lanes), lambda i: (i, 0))],
            out_specs=pl.BlockSpec((block_rows, lanes), lambda i: (i, 0)),
        ),
        compiler_params=pltpu.CompilerParams(
            dimension_semantics=("parallel",),
            allow_input_fusion=[True],          # fuse the reshape into the call under jit
        ),
    )(x2d)

    if padded_total != total:
        return out.reshape(-1)[:total].reshape(orig_shape)
    return out.reshape(orig_shape)


class Activation:
    """JAX/Pallas port of the chestnutseg Activation wrapper."""

    def __init__(self, act=None):
        if act is not None and act not in _ACT_FNS:
            raise KeyError(
                f"{act} does not exist in the supported set "
                f"{sorted(k for k in _ACT_FNS if k)}"
            )
        self._act = act

    def __call__(self, x):
        if self._act is None:
            return x
        return activation(x, self._act)


if __name__ == "__main__":
    key = jax.random.PRNGKey(0)
    x = jax.random.normal(key, (2, 4, 16, 16), dtype=jnp.float32)  # NCHW

    # Reference implementations in plain JAX for verification.
    refs = {
        None: lambda v: v,
        "relu": lambda v: jnp.maximum(v, 0.0),
        "gelu": lambda v: jax.nn.gelu(v, approximate=False),
        "sigmoid": jax.nn.sigmoid,
        "hardswish": lambda v: v * jnp.clip(v / 6.0 + 0.5, 0.0, 1.0),
        "leakyrelu": lambda v: jnp.where(v >= 0, v, 0.01 * v),
        "silu": lambda v: v * jax.nn.sigmoid(v),
        "tanh": jnp.tanh,
    }

    ok = True
    for act_name, ref_fn in refs.items():
        mod = Activation(act_name)
        y = jax.block_until_ready(mod(x))
        y_ref = ref_fn(x)
        if y.shape != x.shape or y.dtype != x.dtype:
            ok = False
            break
        if not jnp.allclose(y, y_ref, atol=1e-5, rtol=1e-5):
            ok = False
            break

    # Also exercise an odd-sized (non-multiple-of-128) tensor to cover the
    # ragged/pad fallback path.
    x_odd = jax.random.normal(jax.random.PRNGKey(1), (3, 5, 7, 9), dtype=jnp.float32)
    y_odd = jax.block_until_ready(Activation("relu")(x_odd))
    if y_odd.shape != x_odd.shape or not jnp.allclose(y_odd, jnp.maximum(x_odd, 0.0)):
        ok = False

    if ok:
        print("KERNEL_OK")
    else:
        print("KERNEL_MISMATCH")
</pallas_src>

<mosaic_0001>
module attributes {stable_mosaic.version = 11 : i64} {
  func.func @_act_kernel(%arg0: i32, %arg1: memref<1x2048xf32, #tpu.memory_space<vmem>>, %arg2: memref<1x2048xf32, #tpu.memory_space<vmem>>) attributes {dimension_semantics = [#tpu.dimension_semantics<parallel>], iteration_bounds = array<i64: 1>, scalar_prefetch = 0 : i64, scratch_operands = 0 : i64, tpu.core_type = #tpu.core_type<tc>, window_params = [{transform_indices = @transform_0, window_bounds = array<i64: 1, 2048>}, {transform_indices = @transform_1, window_bounds = array<i64: 1, 2048>}]} {
    %c0 = arith.constant 0 : index
    %c0_0 = arith.constant 0 : index
    %0 = vector.load %arg1[%c0, %c0_0] : memref<1x2048xf32, #tpu.memory_space<vmem>>, vector<1x2048xf32>
    %cst = arith.constant 0.000000e+00 : f32
    %1 = vector.broadcast %cst : f32 to vector<1x2048xf32>
    %2 = arith.maximumf %0, %1 : vector<1x2048xf32>
    %c0_1 = arith.constant 0 : index
    %c0_2 = arith.constant 0 : index
    %3 = vector.load %arg2[%c0_1, %c0_2] : memref<1x2048xf32, #tpu.memory_space<vmem>>, vector<1x2048xf32>
    tpu.vector_store %arg2[%c0_1, %c0_2], %2 {strides = array<i32>} : memref<1x2048xf32, #tpu.memory_space<vmem>>, vector<1x2048xf32>,
    return
  }
  func.func @transform_0(%arg0: i32) -> (i32, i32) {
    %c0_i32 = arith.constant 0 : i32
    %c0_i32_0 = arith.constant 0 : i32
    return %arg0, %c0_i32 : i32, i32
  }
  func.func @transform_1(%arg0: i32) -> (i32, i32) {
    %c0_i32 = arith.constant 0 : i32
    %c0_i32_0 = arith.constant 0 : i32
    return %arg0, %c0_i32 : i32, i32
  }
}

</mosaic_0001>

<bundles_post_ra>
// kernel: tpu_custom_call.1
= control target key start
LH: loop header
LB: loop body
LE: loop exit
PB: predicated region body
PF: predicated region fallthrough
CT: control target
= control target key end

     0   :  { %6 = vsyncpa [#allocation3], 0  ;;  %s106_s0 = inlined_call_operand.hbm [shape: f32[1,2048], index: 0, kind: input, shape index: {}]   ;;  %s107_s1 = inlined_call_operand.hbm [shape: f32[1,2048], index: 1, kind: output, shape index: {}]  }
   0x1   :  { %7 = vsyncpa [#allocation4], 0  ;;  %s88_s6 = smov [#allocation2]  }
   0x2   :  { %s14_s7 = sshll.u32 %s88_s6, 4  ;;  %s15_s7 = int_to_ptr.vmem [resolvable:$true] %s14_s7 }
   0x3   :  { %s52_s8 = scalar_lea.vmem %s15_s7, 256  ;;  %p57_p1 = scmp.lt.s32.totalorder %s15_s7, %s15_s7 }
   0x4   :  { %p53_p0 = scmp.ne.s32.totalorder %s15_s7, %s52_s8  ;;  %p58_p2 = scmp.lt.s32.totalorder %s52_s8, %s52_s8 }
   0x6   :  { %p59_p3 = por %p58_p2, %p57_p1 }
   0x8   :  { %p60_p4 = pnand %p59_p3, %p53_p0 }
   0xa   :  { %63 = shalt.err (!%p60_p4)
}
   0xb   :  { %17 = dma.hbm_to_vmem [thread:$0]  %s106_s0, 256, %s15_s7, [#allocation3]  }
   0xc   :  { %84 = dma.done.wait [#allocation3], 256  }
   0xd   :  { %85 = vsyncadd [#allocation3], 4294967040  ;;  %s89_s11 = smov [#allocation5]   ;;  %v21_v0 = vld [vmem:[#allocation2] sm:$0xff]  ;;  %v22_v1 = vld [vmem:[#allocation2 + $0x8] sm:$0xff] }
   0xe   :  { %s33_s12 = sshll.u32 %s89_s11, 4  ;;  %v23_v2 = vmax.f32 %v21_v0, 0.0  ;;  %v24_v3 = vmax.f32 %v22_v1, 0.0  ;;  %s34_s12 = int_to_ptr.vmem [resolvable:$true] %s33_s12 }
   0xf   :  { %s64_s13 = scalar_lea.vmem %s34_s12, 256  ;;  %p69_p6 = scmp.lt.s32.totalorder %s34_s12, %s34_s12 }
  0x10   :  { %25 = vst [vmem:[#allocation5] sm:$0xff] %v23_v2  ;;  %26 = vst [vmem:[#allocation5 + $0x8] sm:$0xff] %v24_v3  ;;  %p65_p5 = scmp.ne.s32.totalorder %s34_s12, %s64_s13  ;;  %p70_p7 = scmp.lt.s32.totalorder %s64_s13, %s64_s13 }
  0x12   :  { %p71_p8 = por %p70_p7, %p69_p6 }
  0x14   :  { %p72_p9 = pnand %p71_p8, %p65_p5 }
  0x16   :  { %75 = shalt.err (!%p72_p9)
}
  0x17   :  { %36 = dma.vmem_to_hbm [thread:$0]  %s34_s12, 256, %s107_s1, [#allocation4]  }
  0x18   :  { %86 = dma.done.wait [#allocation4], 256  }
  0x19   :  { %87 = vsyncadd [#allocation4], 4294967040 }
  0x1a   :  { %40 = vsyncpa [#allocation3], 1 }
  0x1b   :  { %41 = vsyncpa [#allocation4], 1 }

</bundles_post_ra>
